<compile_context>
chip_gen: v7x
topology: tpu7x:2x2x1
jax: 0.10.0
libtpu: 0.0.40
codegen_flags: <defaults>
</compile_context>

<pallas_src>
import functools

import jax
import jax.numpy as jnp
from jax.experimental import pallas as pl
from jax.experimental.pallas import tpu as pltpu


def _full_spec(shape):
    # One grid step; every array is one full-extent block resident in VMEM.
    n = len(shape)
    return pl.BlockSpec(shape, lambda i, _n=n: (0,) * _n)


def _model_kernel(num_layers, T, B, *refs):
    # refs = (idx, table, h0, [w_ih, w_hh, b] * L, w_out, b_out, out)
    idx_ref, table_ref, h0_ref = refs[0], refs[1], refs[2]
    layer_refs = refs[3:3 + 3 * num_layers]
    w_out_ref, b_out_ref, out_ref = refs[3 + 3 * num_layers:]

    TB = T * B
    vocab = table_ref.shape[0]
    H = h0_ref.shape[1]

    # ---- embedding lookup via one-hot matmul (MXU-friendly gather) ----
    idx = idx_ref[...]                                              # (TB, 1) i32
    iota = jax.lax.broadcasted_iota(jnp.int32, (TB, vocab), 1)      # (TB, 256)
    onehot = (iota == idx).astype(jnp.float32)
    x = jnp.dot(onehot, table_ref[...],
                preferred_element_type=jnp.float32)                 # (TB, E)

    # initial hidden state, broadcast ONCE (not per layer / per step)
    h0 = jnp.broadcast_to(h0_ref[...], (B, H))                      # (B, H)

    for l in range(num_layers):
        w_ih = layer_refs[3 * l][...]                               # (I_or_H, H)
        w_hh = layer_refs[3 * l + 1][...]                           # (H, H)
        b = layer_refs[3 * l + 2][...]                              # (1, H)

        # Hoisted input projection: one big matmul + fused bias.
        xp = jnp.dot(x, w_ih, preferred_element_type=jnp.float32) + b  # (TB, H)

        # Recurrence: fully unrolled, h carried in vregs; only h @ W_hh
        # remains on the serial critical path.
        h = h0
        hs = []
        for t in range(T):
            pre = xp[t * B:(t + 1) * B, :] + jnp.dot(
                h, w_hh, preferred_element_type=jnp.float32)
            h = jnp.tanh(pre)
            hs.append(h)
        x = jnp.concatenate(hs, axis=0)                             # (TB, H)

    # Fused output layer over all timesteps of the top layer: one matmul,
    # one store.
    out_ref[...] = (jnp.dot(x, w_out_ref[...],
                            preferred_element_type=jnp.float32)
                    + b_out_ref[...])                               # (TB, 4)


def embedding_baseline_forward(sequence, params, *, hidden_size, num_layers):
    """sequence: (B, T) int32 char ids.  Returns predictions (T, B, 4)."""
    B, T = sequence.shape
    table, h0, layer_params, (w_out_t, b_out) = params

    # Flatten indices in (t, b) order so the embedded flat matrix corresponds
    # row-for-row to embeds.permute(1, 0, 2) flattened.
    idx_flat = jnp.transpose(sequence).reshape(T * B, 1).astype(jnp.int32)

    inputs = [idx_flat, table, h0]
    in_specs = [_full_spec(idx_flat.shape), _full_spec(table.shape),
                _full_spec(h0.shape)]
    for (w_ih_t, w_hh_t, b) in layer_params:
        inputs += [w_ih_t, w_hh_t, b]
        in_specs += [_full_spec(w_ih_t.shape), _full_spec(w_hh_t.shape),
                     _full_spec(b.shape)]
    inputs += [w_out_t, b_out]
    in_specs += [_full_spec(w_out_t.shape), _full_spec(b_out.shape)]

    kernel = functools.partial(_model_kernel, num_layers, T, B)

    out_flat = pl.pallas_call(
        kernel,
        out_shape=jax.ShapeDtypeStruct((T * B, 4), jnp.float32),
        grid_spec=pltpu.PrefetchScalarGridSpec(
            num_scalar_prefetch=0,
            grid=(1,),
            in_specs=in_specs,
            out_specs=_full_spec((T * B, 4)),
        ),
        compiler_params=pltpu.CompilerParams(
            dimension_semantics=("arbitrary",)),
    )(*inputs)
    # Wrapper-side reshape (free in XLA) back to (T, B, 4) like the module.
    return out_flat.reshape(T, B, 4)


def init_params(key, embedding_dim, hidden_size, num_layers):
    """Deterministic init mirroring PyTorch defaults."""
    H, E = hidden_size, embedding_dim
    key, kt, kh = jax.random.split(key, 3)
    table = jax.random.normal(kt, (256, E), jnp.float32)   # nn.Embedding: N(0,1)
    h0 = jax.random.normal(kh, (1, H), jnp.float32)        # nn.Parameter(randn(1,1,H))
    bound = 1.0 / jnp.sqrt(jnp.float32(H))
    layer_params = []
    for l in range(num_layers):
        in_dim = E if l == 0 else H
        key, k1, k2, k3, k4 = jax.random.split(key, 5)
        w_ih = jax.random.uniform(k1, (H, in_dim), jnp.float32, -bound, bound)
        w_hh = jax.random.uniform(k2, (H, H), jnp.float32, -bound, bound)
        b_ih = jax.random.uniform(k3, (H,), jnp.float32, -bound, bound)
        b_hh = jax.random.uniform(k4, (H,), jnp.float32, -bound, bound)
        # pre-transpose + fuse biases for the kernel
        layer_params.append((w_ih.T, w_hh.T, (b_ih + b_hh).reshape(1, H)))
    key, k1, k2 = jax.random.split(key, 3)
    w_out = jax.random.uniform(k1, (4, H), jnp.float32, -bound, bound)
    b_out = jax.random.uniform(k2, (4,), jnp.float32, -bound, bound)
    return (table, h0, layer_params, (w_out.T, b_out.reshape(1, 4)))


def ref_forward(sequence, params, *, hidden_size, num_layers):
    """Pure-JAX reference (identical math) for a sanity check."""
    B, T = sequence.shape
    H = hidden_size
    table, h0, layer_params, (w_out_t, b_out) = params
    embeds = table[sequence]                      # (B, T, E)
    x = jnp.transpose(embeds, (1, 0, 2))          # (T, B, E)
    for l in range(num_layers):
        w_ih_t, w_hh_t, b = layer_params[l]
        h = jnp.broadcast_to(h0, (B, H))
        outs = []
        for t in range(T):
            h = jnp.tanh(x[t] @ w_ih_t + h @ w_hh_t + b)
            outs.append(h)
        x = jnp.stack(outs)                       # (T, B, H)
    return x @ w_out_t + b_out                    # (T, B, 4)


if __name__ == "__main__":
    # Small shapes consistent with the module's forward.
    T, B = 8, 4
    EMBEDDING_DIM, HIDDEN_SIZE, NUM_LAYERS = 16, 32, 2

    key = jax.random.PRNGKey(0)
    key, kseq = jax.random.split(key)
    sequence = jax.random.randint(kseq, (B, T), 0, 256, jnp.int32)

    params = init_params(key, EMBEDDING_DIM, HIDDEN_SIZE, NUM_LAYERS)

    preds = embedding_baseline_forward(sequence, params,
                                       hidden_size=HIDDEN_SIZE,
                                       num_layers=NUM_LAYERS)
    preds = jax.block_until_ready(preds)

    ref = ref_forward(sequence, params,
                      hidden_size=HIDDEN_SIZE, num_layers=NUM_LAYERS)
    assert preds.shape == (T, B, 4)
    assert jnp.allclose(preds, ref, atol=1e-4, rtol=1e-4), \
        float(jnp.max(jnp.abs(preds - ref)))

    print("KERNEL_OK")
</pallas_src>

<mosaic_0001>
module attributes {stable_mosaic.version = 11 : i64} {
  func.func @_model_kernel(%arg0: i32, %arg1: memref<32x1xi32, #tpu.memory_space<vmem>>, %arg2: memref<256x16xf32, #tpu.memory_space<vmem>>, %arg3: memref<1x32xf32, #tpu.memory_space<vmem>>, %arg4: memref<16x32xf32, #tpu.memory_space<vmem>>, %arg5: memref<32x32xf32, #tpu.memory_space<vmem>>, %arg6: memref<1x32xf32, #tpu.memory_space<vmem>>, %arg7: memref<32x32xf32, #tpu.memory_space<vmem>>, %arg8: memref<32x32xf32, #tpu.memory_space<vmem>>, %arg9: memref<1x32xf32, #tpu.memory_space<vmem>>, %arg10: memref<32x4xf32, #tpu.memory_space<vmem>>, %arg11: memref<1x4xf32, #tpu.memory_space<vmem>>, %arg12: memref<32x4xf32, #tpu.memory_space<vmem>>) attributes {dimension_semantics = [#tpu.dimension_semantics<arbitrary>], iteration_bounds = array<i64: 1>, scalar_prefetch = 0 : i64, scratch_operands = 0 : i64, tpu.core_type = #tpu.core_type<tc>, window_params = [{pipeline_mode = #tpu.pipeline_mode<synchronous>, transform_indices = @transform_0, window_bounds = array<i64: 32, 1>}, {pipeline_mode = #tpu.pipeline_mode<synchronous>, transform_indices = @transform_1, window_bounds = array<i64: 256, 16>}, {pipeline_mode = #tpu.pipeline_mode<synchronous>, transform_indices = @transform_2, window_bounds = array<i64: 1, 32>}, {pipeline_mode = #tpu.pipeline_mode<synchronous>, transform_indices = @transform_3, window_bounds = array<i64: 16, 32>}, {pipeline_mode = #tpu.pipeline_mode<synchronous>, transform_indices = @transform_4, window_bounds = array<i64: 32, 32>}, {pipeline_mode = #tpu.pipeline_mode<synchronous>, transform_indices = @transform_5, window_bounds = array<i64: 1, 32>}, {pipeline_mode = #tpu.pipeline_mode<synchronous>, transform_indices = @transform_6, window_bounds = array<i64: 32, 32>}, {pipeline_mode = #tpu.pipeline_mode<synchronous>, transform_indices = @transform_7, window_bounds = array<i64: 32, 32>}, {pipeline_mode = #tpu.pipeline_mode<synchronous>, transform_indices = @transform_8, window_bounds = array<i64: 1, 32>}, {pipeline_mode = #tpu.pipeline_mode<synchronous>, transform_indices = @transform_9, window_bounds = array<i64: 32, 4>}, {pipeline_mode = #tpu.pipeline_mode<synchronous>, transform_indices = @transform_10, window_bounds = array<i64: 1, 4>}, {pipeline_mode = #tpu.pipeline_mode<synchronous>, transform_indices = @transform_11, window_bounds = array<i64: 32, 4>}]} {
    %c0 = arith.constant 0 : index
    %c0_0 = arith.constant 0 : index
    %0 = vector.load %arg1[%c0, %c0_0] : memref<32x1xi32, #tpu.memory_space<vmem>>, vector<32x1xi32>
    %1 = tpu.iota {dimensions = array<i32: 1>} : vector<32x256xi32>
    %2 = vector.broadcast %0 : vector<32x1xi32> to vector<32x256xi32>
    %3 = arith.cmpi eq, %1, %2 : vector<32x256xi32>
    %4 = arith.extui %3 : vector<32x256xi1> to vector<32x256xi32>
    %5 = arith.sitofp %4 : vector<32x256xi32> to vector<32x256xf32>
    %c0_1 = arith.constant 0 : index
    %c0_2 = arith.constant 0 : index
    %6 = vector.load %arg2[%c0_1, %c0_2] : memref<256x16xf32, #tpu.memory_space<vmem>>, vector<256x16xf32>
    %cst = arith.constant dense<0.000000e+00> : vector<32x16xf32>
    %7 = tpu.matmul %5, %6, %cst {dimension_numbers = #tpu.dot_dimension_numbers<[1], [0], [0], [1], [0, 0, 1, 1], [], []>} : vector<32x256xf32>, vector<256x16xf32>, vector<32x16xf32> -> vector<32x16xf32>
    %c0_3 = arith.constant 0 : index
    %c0_4 = arith.constant 0 : index
    %8 = vector.load %arg3[%c0_3, %c0_4] : memref<1x32xf32, #tpu.memory_space<vmem>>, vector<1x32xf32>
    %9 = vector.shape_cast %8 : vector<1x32xf32> to vector<1x32xf32>
    %10 = vector.broadcast %9 : vector<1x32xf32> to vector<4x32xf32>
    %c0_5 = arith.constant 0 : index
    %c0_6 = arith.constant 0 : index
    %11 = vector.load %arg4[%c0_5, %c0_6] : memref<16x32xf32, #tpu.memory_space<vmem>>, vector<16x32xf32>
    %c0_7 = arith.constant 0 : index
    %c0_8 = arith.constant 0 : index
    %12 = vector.load %arg5[%c0_7, %c0_8] : memref<32x32xf32, #tpu.memory_space<vmem>>, vector<32x32xf32>
    %c0_9 = arith.constant 0 : index
    %c0_10 = arith.constant 0 : index
    %13 = vector.load %arg6[%c0_9, %c0_10] : memref<1x32xf32, #tpu.memory_space<vmem>>, vector<1x32xf32>
    %cst_11 = arith.constant dense<0.000000e+00> : vector<32x32xf32>
    %14 = tpu.matmul %7, %11, %cst_11 {dimension_numbers = #tpu.dot_dimension_numbers<[1], [0], [0], [1], [0, 0, 1, 1], [], []>} : vector<32x16xf32>, vector<16x32xf32>, vector<32x32xf32> -> vector<32x32xf32>
    %15 = vector.broadcast %13 : vector<1x32xf32> to vector<32x32xf32>
    %16 = arith.addf %14, %15 : vector<32x32xf32>
    %17 = vector.extract_strided_slice %16 {offsets = [0, 0], sizes = [4, 32], strides = [1, 1]} : vector<32x32xf32> to vector<4x32xf32>
    %cst_12 = arith.constant dense<0.000000e+00> : vector<4x32xf32>
    %18 = tpu.matmul %10, %12, %cst_12 {dimension_numbers = #tpu.dot_dimension_numbers<[1], [0], [0], [1], [0, 0, 1, 1], [], []>} : vector<4x32xf32>, vector<32x32xf32>, vector<4x32xf32> -> vector<4x32xf32>
    %19 = arith.addf %17, %18 : vector<4x32xf32>
    %20 = math.tanh %19 : vector<4x32xf32>
    %21 = vector.extract_strided_slice %16 {offsets = [4, 0], sizes = [4, 32], strides = [1, 1]} : vector<32x32xf32> to vector<4x32xf32>
    %cst_13 = arith.constant dense<0.000000e+00> : vector<4x32xf32>
    %22 = tpu.matmul %20, %12, %cst_13 {dimension_numbers = #tpu.dot_dimension_numbers<[1], [0], [0], [1], [0, 0, 1, 1], [], []>} : vector<4x32xf32>, vector<32x32xf32>, vector<4x32xf32> -> vector<4x32xf32>
    %23 = arith.addf %21, %22 : vector<4x32xf32>
    %24 = math.tanh %23 : vector<4x32xf32>
    %25 = vector.extract_strided_slice %16 {offsets = [8, 0], sizes = [4, 32], strides = [1, 1]} : vector<32x32xf32> to vector<4x32xf32>
    %cst_14 = arith.constant dense<0.000000e+00> : vector<4x32xf32>
    %26 = tpu.matmul %24, %12, %cst_14 {dimension_numbers = #tpu.dot_dimension_numbers<[1], [0], [0], [1], [0, 0, 1, 1], [], []>} : vector<4x32xf32>, vector<32x32xf32>, vector<4x32xf32> -> vector<4x32xf32>
    %27 = arith.addf %25, %26 : vector<4x32xf32>
    %28 = math.tanh %27 : vector<4x32xf32>
    %29 = vector.extract_strided_slice %16 {offsets = [12, 0], sizes = [4, 32], strides = [1, 1]} : vector<32x32xf32> to vector<4x32xf32>
    %cst_15 = arith.constant dense<0.000000e+00> : vector<4x32xf32>
    %30 = tpu.matmul %28, %12, %cst_15 {dimension_numbers = #tpu.dot_dimension_numbers<[1], [0], [0], [1], [0, 0, 1, 1], [], []>} : vector<4x32xf32>, vector<32x32xf32>, vector<4x32xf32> -> vector<4x32xf32>
    %31 = arith.addf %29, %30 : vector<4x32xf32>
    %32 = math.tanh %31 : vector<4x32xf32>
    %33 = vector.extract_strided_slice %16 {offsets = [16, 0], sizes = [4, 32], strides = [1, 1]} : vector<32x32xf32> to vector<4x32xf32>
    %cst_16 = arith.constant dense<0.000000e+00> : vector<4x32xf32>
    %34 = tpu.matmul %32, %12, %cst_16 {dimension_numbers = #tpu.dot_dimension_numbers<[1], [0], [0], [1], [0, 0, 1, 1], [], []>} : vector<4x32xf32>, vector<32x32xf32>, vector<4x32xf32> -> vector<4x32xf32>
    %35 = arith.addf %33, %34 : vector<4x32xf32>
    %36 = math.tanh %35 : vector<4x32xf32>
    %37 = vector.extract_strided_slice %16 {offsets = [20, 0], sizes = [4, 32], strides = [1, 1]} : vector<32x32xf32> to vector<4x32xf32>
    %cst_17 = arith.constant dense<0.000000e+00> : vector<4x32xf32>
    %38 = tpu.matmul %36, %12, %cst_17 {dimension_numbers = #tpu.dot_dimension_numbers<[1], [0], [0], [1], [0, 0, 1, 1], [], []>} : vector<4x32xf32>, vector<32x32xf32>, vector<4x32xf32> -> vector<4x32xf32>
    %39 = arith.addf %37, %38 : vector<4x32xf32>
    %40 = math.tanh %39 : vector<4x32xf32>
    %41 = vector.extract_strided_slice %16 {offsets = [24, 0], sizes = [4, 32], strides = [1, 1]} : vector<32x32xf32> to vector<4x32xf32>
    %cst_18 = arith.constant dense<0.000000e+00> : vector<4x32xf32>
    %42 = tpu.matmul %40, %12, %cst_18 {dimension_numbers = #tpu.dot_dimension_numbers<[1], [0], [0], [1], [0, 0, 1, 1], [], []>} : vector<4x32xf32>, vector<32x32xf32>, vector<4x32xf32> -> vector<4x32xf32>
    %43 = arith.addf %41, %42 : vector<4x32xf32>
    %44 = math.tanh %43 : vector<4x32xf32>
    %45 = vector.extract_strided_slice %16 {offsets = [28, 0], sizes = [4, 32], strides = [1, 1]} : vector<32x32xf32> to vector<4x32xf32>
    %cst_19 = arith.constant dense<0.000000e+00> : vector<4x32xf32>
    %46 = tpu.matmul %44, %12, %cst_19 {dimension_numbers = #tpu.dot_dimension_numbers<[1], [0], [0], [1], [0, 0, 1, 1], [], []>} : vector<4x32xf32>, vector<32x32xf32>, vector<4x32xf32> -> vector<4x32xf32>
    %47 = arith.addf %45, %46 : vector<4x32xf32>
    %48 = math.tanh %47 : vector<4x32xf32>
    %49 = tpu.concatenate %20, %24, %28, %32, %36, %40, %44, %48 in 0 : vector<4x32xf32>, vector<4x32xf32>, vector<4x32xf32>, vector<4x32xf32>, vector<4x32xf32>, vector<4x32xf32>, vector<4x32xf32>, vector<4x32xf32> -> vector<32x32xf32>
    %c0_20 = arith.constant 0 : index
    %c0_21 = arith.constant 0 : index
    %50 = vector.load %arg7[%c0_20, %c0_21] : memref<32x32xf32, #tpu.memory_space<vmem>>, vector<32x32xf32>
    %c0_22 = arith.constant 0 : index
    %c0_23 = arith.constant 0 : index
    %51 = vector.load %arg8[%c0_22, %c0_23] : memref<32x32xf32, #tpu.memory_space<vmem>>, vector<32x32xf32>
    %c0_24 = arith.constant 0 : index
    %c0_25 = arith.constant 0 : index
    %52 = vector.load %arg9[%c0_24, %c0_25] : memref<1x32xf32, #tpu.memory_space<vmem>>, vector<1x32xf32>
    %cst_26 = arith.constant dense<0.000000e+00> : vector<32x32xf32>
    %53 = tpu.matmul %49, %50, %cst_26 {dimension_numbers = #tpu.dot_dimension_numbers<[1], [0], [0], [1], [0, 0, 1, 1], [], []>} : vector<32x32xf32>, vector<32x32xf32>, vector<32x32xf32> -> vector<32x32xf32>
    %54 = vector.broadcast %52 : vector<1x32xf32> to vector<32x32xf32>
    %55 = arith.addf %53, %54 : vector<32x32xf32>
    %56 = vector.extract_strided_slice %55 {offsets = [0, 0], sizes = [4, 32], strides = [1, 1]} : vector<32x32xf32> to vector<4x32xf32>
    %cst_27 = arith.constant dense<0.000000e+00> : vector<4x32xf32>
    %57 = tpu.matmul %10, %51, %cst_27 {dimension_numbers = #tpu.dot_dimension_numbers<[1], [0], [0], [1], [0, 0, 1, 1], [], []>} : vector<4x32xf32>, vector<32x32xf32>, vector<4x32xf32> -> vector<4x32xf32>
    %58 = arith.addf %56, %57 : vector<4x32xf32>
    %59 = math.tanh %58 : vector<4x32xf32>
    %60 = vector.extract_strided_slice %55 {offsets = [4, 0], sizes = [4, 32], strides = [1, 1]} : vector<32x32xf32> to vector<4x32xf32>
    %cst_28 = arith.constant dense<0.000000e+00> : vector<4x32xf32>
    %61 = tpu.matmul %59, %51, %cst_28 {dimension_numbers = #tpu.dot_dimension_numbers<[1], [0], [0], [1], [0, 0, 1, 1], [], []>} : vector<4x32xf32>, vector<32x32xf32>, vector<4x32xf32> -> vector<4x32xf32>
    %62 = arith.addf %60, %61 : vector<4x32xf32>
    %63 = math.tanh %62 : vector<4x32xf32>
    %64 = vector.extract_strided_slice %55 {offsets = [8, 0], sizes = [4, 32], strides = [1, 1]} : vector<32x32xf32> to vector<4x32xf32>
    %cst_29 = arith.constant dense<0.000000e+00> : vector<4x32xf32>
    %65 = tpu.matmul %63, %51, %cst_29 {dimension_numbers = #tpu.dot_dimension_numbers<[1], [0], [0], [1], [0, 0, 1, 1], [], []>} : vector<4x32xf32>, vector<32x32xf32>, vector<4x32xf32> -> vector<4x32xf32>
    %66 = arith.addf %64, %65 : vector<4x32xf32>
    %67 = math.tanh %66 : vector<4x32xf32>
    %68 = vector.extract_strided_slice %55 {offsets = [12, 0], sizes = [4, 32], strides = [1, 1]} : vector<32x32xf32> to vector<4x32xf32>
    %cst_30 = arith.constant dense<0.000000e+00> : vector<4x32xf32>
    %69 = tpu.matmul %67, %51, %cst_30 {dimension_numbers = #tpu.dot_dimension_numbers<[1], [0], [0], [1], [0, 0, 1, 1], [], []>} : vector<4x32xf32>, vector<32x32xf32>, vector<4x32xf32> -> vector<4x32xf32>
    %70 = arith.addf %68, %69 : vector<4x32xf32>
    %71 = math.tanh %70 : vector<4x32xf32>
    %72 = vector.extract_strided_slice %55 {offsets = [16, 0], sizes = [4, 32], strides = [1, 1]} : vector<32x32xf32> to vector<4x32xf32>
    %cst_31 = arith.constant dense<0.000000e+00> : vector<4x32xf32>
    %73 = tpu.matmul %71, %51, %cst_31 {dimension_numbers = #tpu.dot_dimension_numbers<[1], [0], [0], [1], [0, 0, 1, 1], [], []>} : vector<4x32xf32>, vector<32x32xf32>, vector<4x32xf32> -> vector<4x32xf32>
    %74 = arith.addf %72, %73 : vector<4x32xf32>
    %75 = math.tanh %74 : vector<4x32xf32>
    %76 = vector.extract_strided_slice %55 {offsets = [20, 0], sizes = [4, 32], strides = [1, 1]} : vector<32x32xf32> to vector<4x32xf32>
    %cst_32 = arith.constant dense<0.000000e+00> : vector<4x32xf32>
    %77 = tpu.matmul %75, %51, %cst_32 {dimension_numbers = #tpu.dot_dimension_numbers<[1], [0], [0], [1], [0, 0, 1, 1], [], []>} : vector<4x32xf32>, vector<32x32xf32>, vector<4x32xf32> -> vector<4x32xf32>
    %78 = arith.addf %76, %77 : vector<4x32xf32>
    %79 = math.tanh %78 : vector<4x32xf32>
    %80 = vector.extract_strided_slice %55 {offsets = [24, 0], sizes = [4, 32], strides = [1, 1]} : vector<32x32xf32> to vector<4x32xf32>
    %cst_33 = arith.constant dense<0.000000e+00> : vector<4x32xf32>
    %81 = tpu.matmul %79, %51, %cst_33 {dimension_numbers = #tpu.dot_dimension_numbers<[1], [0], [0], [1], [0, 0, 1, 1], [], []>} : vector<4x32xf32>, vector<32x32xf32>, vector<4x32xf32> -> vector<4x32xf32>
    %82 = arith.addf %80, %81 : vector<4x32xf32>
    %83 = math.tanh %82 : vector<4x32xf32>
    %84 = vector.extract_strided_slice %55 {offsets = [28, 0], sizes = [4, 32], strides = [1, 1]} : vector<32x32xf32> to vector<4x32xf32>
    %cst_34 = arith.constant dense<0.000000e+00> : vector<4x32xf32>
    %85 = tpu.matmul %83, %51, %cst_34 {dimension_numbers = #tpu.dot_dimension_numbers<[1], [0], [0], [1], [0, 0, 1, 1], [], []>} : vector<4x32xf32>, vector<32x32xf32>, vector<4x32xf32> -> vector<4x32xf32>
    %86 = arith.addf %84, %85 : vector<4x32xf32>
    %87 = math.tanh %86 : vector<4x32xf32>
    %88 = tpu.concatenate %59, %63, %67, %71, %75, %79, %83, %87 in 0 : vector<4x32xf32>, vector<4x32xf32>, vector<4x32xf32>, vector<4x32xf32>, vector<4x32xf32>, vector<4x32xf32>, vector<4x32xf32>, vector<4x32xf32> -> vector<32x32xf32>
    %c0_35 = arith.constant 0 : index
    %c0_36 = arith.constant 0 : index
    %89 = vector.load %arg10[%c0_35, %c0_36] : memref<32x4xf32, #tpu.memory_space<vmem>>, vector<32x4xf32>
    %cst_37 = arith.constant dense<0.000000e+00> : vector<32x4xf32>
    %90 = tpu.matmul %88, %89, %cst_37 {dimension_numbers = #tpu.dot_dimension_numbers<[1], [0], [0], [1], [0, 0, 1, 1], [], []>} : vector<32x32xf32>, vector<32x4xf32>, vector<32x4xf32> -> vector<32x4xf32>
    %c0_38 = arith.constant 0 : index
    %c0_39 = arith.constant 0 : index
    %91 = vector.load %arg11[%c0_38, %c0_39] : memref<1x4xf32, #tpu.memory_space<vmem>>, vector<1x4xf32>
    %92 = vector.broadcast %91 : vector<1x4xf32> to vector<32x4xf32>
    %93 = arith.addf %90, %92 : vector<32x4xf32>
    %c0_40 = arith.constant 0 : index
    %c0_41 = arith.constant 0 : index
    %94 = vector.load %arg12[%c0_40, %c0_41] : memref<32x4xf32, #tpu.memory_space<vmem>>, vector<32x4xf32>
    tpu.vector_store %arg12[%c0_40, %c0_41], %93 {strides = array<i32>} : memref<32x4xf32, #tpu.memory_space<vmem>>, vector<32x4xf32>,
    return
  }
  func.func @transform_0(%arg0: i32) -> (i32, i32) {
    %c0_i32 = arith.constant 0 : i32
    %c0_i32_0 = arith.constant 0 : i32
    %c0_i32_1 = arith.constant 0 : i32
    return %c0_i32, %c0_i32_0 : i32, i32
  }
  func.func @transform_1(%arg0: i32) -> (i32, i32) {
    %c0_i32 = arith.constant 0 : i32
    %c0_i32_0 = arith.constant 0 : i32
    %c0_i32_1 = arith.constant 0 : i32
    return %c0_i32, %c0_i32_0 : i32, i32
  }
  func.func @transform_2(%arg0: i32) -> (i32, i32) {
    %c0_i32 = arith.constant 0 : i32
    %c0_i32_0 = arith.constant 0 : i32
    %c0_i32_1 = arith.constant 0 : i32
    return %c0_i32, %c0_i32_0 : i32, i32
  }
  func.func @transform_3(%arg0: i32) -> (i32, i32) {
    %c0_i32 = arith.constant 0 : i32
    %c0_i32_0 = arith.constant 0 : i32
    %c0_i32_1 = arith.constant 0 : i32
    return %c0_i32, %c0_i32_0 : i32, i32
  }
  func.func @transform_4(%arg0: i32) -> (i32, i32) {
    %c0_i32 = arith.constant 0 : i32
    %c0_i32_0 = arith.constant 0 : i32
    %c0_i32_1 = arith.constant 0 : i32
    return %c0_i32, %c0_i32_0 : i32, i32
  }
  func.func @transform_5(%arg0: i32) -> (i32, i32) {
    %c0_i32 = arith.constant 0 : i32
    %c0_i32_0 = arith.constant 0 : i32
    %c0_i32_1 = arith.constant 0 : i32
    return %c0_i32, %c0_i32_0 : i32, i32
  }
  func.func @transform_6(%arg0: i32) -> (i32, i32) {
    %c0_i32 = arith.constant 0 : i32
    %c0_i32_0 = arith.constant 0 : i32
    %c0_i32_1 = arith.constant 0 : i32
    return %c0_i32, %c0_i32_0 : i32, i32
  }
  func.func @transform_7(%arg0: i32) -> (i32, i32) {
    %c0_i32 = arith.constant 0 : i32
    %c0_i32_0 = arith.constant 0 : i32
    %c0_i32_1 = arith.constant 0 : i32
    return %c0_i32, %c0_i32_0 : i32, i32
  }
  func.func @transform_8(%arg0: i32) -> (i32, i32) {
    %c0_i32 = arith.constant 0 : i32
    %c0_i32_0 = arith.constant 0 : i32
    %c0_i32_1 = arith.constant 0 : i32
    return %c0_i32, %c0_i32_0 : i32, i32
  }
  func.func @transform_9(%arg0: i32) -> (i32, i32) {
    %c0_i32 = arith.constant 0 : i32
    %c0_i32_0 = arith.constant 0 : i32
    %c0_i32_1 = arith.constant 0 : i32
    return %c0_i32, %c0_i32_0 : i32, i32
  }
  func.func @transform_10(%arg0: i32) -> (i32, i32) {
    %c0_i32 = arith.constant 0 : i32
    %c0_i32_0 = arith.constant 0 : i32
    %c0_i32_1 = arith.constant 0 : i32
    return %c0_i32, %c0_i32_0 : i32, i32
  }
  func.func @transform_11(%arg0: i32) -> (i32, i32) {
    %c0_i32 = arith.constant 0 : i32
    %c0_i32_0 = arith.constant 0 : i32
    %c0_i32_1 = arith.constant 0 : i32
    return %c0_i32, %c0_i32_0 : i32, i32
  }
}

</mosaic_0001>

<bundles_post_ra>
// kernel: tpu_custom_call.1
= control target key start
LH: loop header
LB: loop body
LE: loop exit
PB: predicated region body
PF: predicated region fallthrough
CT: control target
= control target key end

     0   :  { %v2375_v0 = vmov 0   ;;  %v42_v53 = vlaneseq  ;;  %v2376_v57 = vmov 1.0   ;;  %vm2378_vm8 = vmmov 0   ;;  %s2799_s0 = inlined_call_operand.vmem [shape: s32[32,1], index: 0, kind: input, shape index: {}]   ;;  %s2800_s1 = inlined_call_operand.vmem [shape: f32[256,16], index: 1, kind: input, shape index: {}]   ;;  %s2801_s3 = inlined_call_operand.vmem [shape: f32[16,32], index: 3, kind: input, shape index: {}]   ;;  %s2802_s4 = inlined_call_operand.vmem [shape: f32[32,32], index: 4, kind: input, shape index: {}]   ;;  %s2803_s2 = inlined_call_operand.vmem [shape: f32[1,32], index: 2, kind: input, shape index: {}]   ;;  %s2804_s5 = inlined_call_operand.vmem [shape: f32[1,32], index: 5, kind: input, shape index: {}]   ;;  %s2805_s6 = inlined_call_operand.vmem [shape: f32[32,32], index: 6, kind: input, shape index: {}]   ;;  %s2806_s7 = inlined_call_operand.vmem [shape: f32[32,32], index: 7, kind: input, shape index: {}]   ;;  %s2807_s8 = inlined_call_operand.vmem [shape: f32[1,32], index: 8, kind: input, shape index: {}]   ;;  %s2808_s9 = inlined_call_operand.vmem [shape: f32[32,4], index: 9, kind: input, shape index: {}]   ;;  %s2809_s10 = inlined_call_operand.vmem [shape: f32[1,4], index: 10, kind: input, shape index: {}]   ;;  %s2810_s11 = inlined_call_operand.vmem [shape: f32[32,4], index: 11, kind: output, shape index: {}]  }
   0x1   :  { %2341 = vset.pattern.permute.xlu0 %v2375_v0  ;;  %v38_v1 = vld [vmem:[%s2799_s0] sm:$0xff]  ;;  %2342 = vset.pattern.permute.xlu1 %v2375_v0  ;;  %v40_v2 = vld [vmem:[%s2799_s0 + $0x10] sm:$0xff]  ;;  %v39_v3 = vld [vmem:[%s2799_s0 + $0x8] sm:$0xff]  ;;  %vm217_vm9 = vcmask 130048   ;;  %vm315_vm10 = vcmask 261120   ;;  %vm930_vm11 = vcmask 1043456  }
   0x2   :  { %46 = vperm.xlu0 %2341, %v38_v1   ;;  %52 = vperm.xlu1 %2342, %v40_v2   ;;  %v41_v4 = vld [vmem:[%s2799_s0 + $0x18] sm:$0xff]  ;;  %v97_v5 = vld [vmem:[%s2800_s1 + $0x80] sm:$0xff]  ;;  %v98_v6 = vld [vmem:[%s2800_s1 + $0x88] sm:$0xff]  ;;  %v43_v54 = vand.u32 127, %v42_v53  ;;  %v2377_v2 = vmov 0.0|0.0   ;;  %vm1771_vm12 = vcmask 31744  }
   0x3   :  { %v2188_v7 = vpack.c.bf16 %v98_v6, %v97_v5  ;;  %v81_v8 = vld [vmem:[%s2800_s1] sm:$0xff]  ;;  %v82_v9 = vld [vmem:[%s2800_s1 + $0x8] sm:$0xff]  ;;  %v99_v10 = vld [vmem:[%s2800_s1 + $0x90] sm:$0xff] }
   0x4   :  { %v2190_v11 = vpack.c.bf16 %v82_v9, %v81_v8  ;;  %v100_v12 = vld [vmem:[%s2800_s1 + $0x98] sm:$0xff]  ;;  %v83_v13 = vld [vmem:[%s2800_s1 + $0x10] sm:$0xff]  ;;  %v101_v16 = vld [vmem:[%s2800_s1 + $0xa0] sm:$0xff]  ;;  %v44_v55 = vadd.s32 128, %v43_v54 }
   0x5   :  { %v84_v14 = vld [vmem:[%s2800_s1 + $0x18] sm:$0xff]  ;;  %2189 = vmatprep.subr.bf16.mxu0 %v2188_v7  ;;  %v2192_v15 = vpack.c.bf16 %v100_v12, %v99_v10  ;;  %v102_v17 = vld [vmem:[%s2800_s1 + $0xa8] sm:$0xff]  ;;  %v85_v20 = vld [vmem:[%s2800_s1 + $0x20] sm:$0xff]  ;;  %v2379_v7 = vmov 0.0  }
   0x6   :  { %49 = vperm.xlu0 %2341, %v39_v3   ;;  %55 = vperm.xlu1 %2342, %v41_v4   ;;  %v2194_v18 = vpack.c.bf16 %v84_v14, %v83_v13  ;;  %v2196_v19 = vpack.c.bf16 %v102_v17, %v101_v16  ;;  %v86_v21 = vld [vmem:[%s2800_s1 + $0x28] sm:$0xff]  ;;  %v103_v22 = vld [vmem:[%s2800_s1 + $0xb0] sm:$0xff]  ;;  %v104_v23 = vld [vmem:[%s2800_s1 + $0xb8] sm:$0xff] }
   0x7   :  { %2191 = vmatpush3.bf16.msra.mxu0 %v2190_v11  ;;  %v2198_v24 = vpack.c.bf16 %v86_v21, %v85_v20  ;;  %v2200_v25 = vpack.c.bf16 %v104_v23, %v103_v22  ;;  %v87_v26 = vld [vmem:[%s2800_s1 + $0x30] sm:$0xff]  ;;  %v88_v27 = vld [vmem:[%s2800_s1 + $0x38] sm:$0xff]  ;;  %v105_v28 = vld [vmem:[%s2800_s1 + $0xc0] sm:$0xff] }
   0x8   :  { %2193 = vmatprep.subr.bf16.mxu0 %v2192_v15  ;;  %v106_v29 = vld [vmem:[%s2800_s1 + $0xc8] sm:$0xff]  ;;  %v2202_v30 = vpack.c.bf16 %v88_v27, %v87_v26  ;;  %v89_v32 = vld [vmem:[%s2800_s1 + $0x40] sm:$0xff]  ;;  %v107_v34 = vld [vmem:[%s2800_s1 + $0xd0] sm:$0xff] }
   0x9   :  { %v2204_v31 = vpack.c.bf16 %v106_v29, %v105_v28  ;;  %v90_v33 = vld [vmem:[%s2800_s1 + $0x48] sm:$0xff]  ;;  %v108_v35 = vld [vmem:[%s2800_s1 + $0xd8] sm:$0xff]  ;;  %v91_v38 = vld [vmem:[%s2800_s1 + $0x50] sm:$0xff] }
   0xa   :  { %v2206_v36 = vpack.c.bf16 %v90_v33, %v89_v32  ;;  %v2208_v37 = vpack.c.bf16 %v108_v35, %v107_v34  ;;  %v92_v39 = vld [vmem:[%s2800_s1 + $0x58] sm:$0xff]  ;;  %v109_v40 = vld [vmem:[%s2800_s1 + $0xe0] sm:$0xff]  ;;  %v110_v41 = vld [vmem:[%s2800_s1 + $0xe8] sm:$0xff] }
   0xb   :  { %2195 = vmatpush3.bf16.msra.mxu0 %v2194_v18  ;;  %v2210_v42 = vpack.c.bf16 %v92_v39, %v91_v38  ;;  %v2212_v43 = vpack.c.bf16 %v110_v41, %v109_v40  ;;  %v93_v44 = vld [vmem:[%s2800_s1 + $0x60] sm:$0xff]  ;;  %v94_v45 = vld [vmem:[%s2800_s1 + $0x68] sm:$0xff]  ;;  %v111_v46 = vld [vmem:[%s2800_s1 + $0xf0] sm:$0xff] }
   0xc   :  { %2197 = vmatprep.subr.bf16.mxu0 %v2196_v19  ;;  %v112_v47 = vld [vmem:[%s2800_s1 + $0xf8] sm:$0xff]  ;;  %v2214_v48 = vpack.c.bf16 %v94_v45, %v93_v44  ;;  %v95_v50 = vld [vmem:[%s2800_s1 + $0x70] sm:$0xff]  ;;  %v204_v61 = vld [vmem:[%s2801_s3] sm:$0xff] }
   0xd   :  { %v2216_v49 = vpack.c.bf16 %v112_v47, %v111_v46  ;;  %v96_v51 = vld [vmem:[%s2800_s1 + $0x78] sm:$0xff]  ;;  %v205_v62 = vld [vmem:[%s2801_s3 + $0x8] sm:$0xff]  ;;  %v206_v0 = vld [vmem:[%s2802_s4] sm:$0xff] }
   0xe   :  { %v2218_v52 = vpack.c.bf16 %v96_v51, %v95_v50  ;;  %v2220_v63 = vpack.c.bf16 %v205_v62, %v204_v61  ;;  %v207_v1 = vld [vmem:[%s2802_s4 + $0x8] sm:$0xff]  ;;  %v208_v4 = vld [vmem:[%s2802_s4 + $0x10] sm:$0xff]  ;;  %v209_v5 = vld [vmem:[%s2802_s4 + $0x18] sm:$0xff] }
   0xf   :  { %2199 = vmatpush3.bf16.msra.mxu0 %v2198_v24  ;;  %v2561_v3 = vpack.c.bf16 %v207_v1, %v206_v0  ;;  %v2572_v6 = vpack.c.bf16 %v209_v5, %v208_v4  ;;  %v2591_v20 = vld [vmem:[%s2803_s2] ss:$0 sm:$0xff]  ;;  %v937_v61 = vld [vmem:[%s2805_s6 + $0x10] sm:$0xff]  ;;  %v938_v62 = vld [vmem:[%s2805_s6 + $0x18] sm:$0xff] }
  0x10   :  { %2201 = vmatprep.subr.bf16.mxu0 %v2200_v25  ;;  %2221 = vmatprep.subr.bf16.mxu1 %v2220_v63  ;;  %v1797_v21 = vld [vmem:[%s2804_s5] ss:$0 sm:$0xff]  ;;  %v2276_v1 = vpack.c.bf16 %v938_v62, %v937_v61 }
  0x11   :  { %2223 = vmatpush3.bf16.msra.mxu1 %v2220_v63 }
  0x12   :  { %2224 = vmatprep.subr.bf16.mxu1 %v2377_v2 }
  0x13   :  { %2203 = vmatpush3.bf16.msra.mxu0 %v2202_v30 }
  0x14   :  { %2205 = vmatprep.subr.bf16.mxu0 %v2204_v31 }
  0x17   :  { %2207 = vmatpush3.bf16.msra.mxu0 %v2206_v36 }
  0x18   :  { %2209 = vmatprep.subr.bf16.mxu0 %v2208_v37 }
  0x1b   :  { %2211 = vmatpush3.bf16.msra.mxu0 %v2210_v42 }
  0x1c   :  { %2213 = vmatprep.subr.bf16.mxu0 %v2212_v43 }
  0x1f   :  { %2215 = vmatpush3.bf16.msra.mxu0 %v2214_v48 }
  0x20   :  { %2217 = vmatprep.subr.bf16.mxu0 %v2216_v49 }
  0x23   :  { %2219 = vmatpush3.bf16.msra.mxu0 %v2218_v52 }
  0x24   :  { %2254 = vmatprep.subr.bf16.mxu0 %v2377_v2 }
  0x81   :  { %v47_v56 = vpop.permute.xlu0 %46  ;;  %v53_v58 = vpop.permute.xlu1 %52 }
  0x82   :  { %vm57_vm0 = vcmp.eq.s32.totalorder %v43_v54, %v47_v56  ;;  %vm58_vm1 = vcmp.eq.s32.totalorder %v44_v55, %v47_v56  ;;  %vm62_vm2 = vcmp.eq.s32.totalorder %v44_v55, %v53_v58  ;;  %vm61_vm5 = vcmp.eq.s32.totalorder %v43_v54, %v53_v58 }
  0x83   :  { %1788 = vmatprep.mubr.msk.f32.mxu0 %vm58_vm1, %v2376_v57 }
  0x84   :  { %1789 = vmatmul.mubr.msk.f32.vlgmr.msra.gmra.mrb[0].mxu0 %vm57_vm0, %v2376_v57 }
  0x85   :  { %v50_v59 = vpop.permute.xlu0 %49  ;;  %v56_v60 = vpop.permute.xlu1 %55  ;;  %2256 = vmatpush3.bf16.msra.mxu0 %v2561_v3 }
  0x86   :  { %vm59_vm3 = vcmp.eq.s32.totalorder %v43_v54, %v50_v59  ;;  %vm60_vm4 = vcmp.eq.s32.totalorder %v44_v55, %v50_v59  ;;  %vm64_vm6 = vcmp.eq.s32.totalorder %v44_v55, %v56_v60  ;;  %vm63_vm7 = vcmp.eq.s32.totalorder %v43_v54, %v56_v60  ;;  %2257 = vmatprep.subr.bf16.mxu0 %v2377_v2  ;;  %v935_v54 = vld [vmem:[%s2805_s6] sm:$0xff]  ;;  %v936_v55 = vld [vmem:[%s2805_s6 + $0x8] sm:$0xff] }
  0x87   :  { %1790 = vmatprep.mubr.msk.f32.mxu0 %vm60_vm4, %v2376_v57  ;;  %v2272_v56 = vpack.c.bf16 %v936_v55, %v935_v54  ;;  %v1663_v55 = vld [vmem:[%s2808_s9] sm:$0xff] }
  0x88   :  { %1791 = vmatmul.mubr.msk.f32.gmra.mrb[2].mxu0 %vm59_vm3, %v2376_v57 }
  0x89   :  { %1792 = vmatprep.mubr.msk.f32.mxu0 %vm62_vm2, %v2376_v57  ;;  %2259 = vmatpush3.bf16.msra.mxu0 %v2572_v6 }
  0x8a   :  { %2266 = vmatprep.subr.bf16.mxu0 %v2377_v2 }
  0x8c   :  { %1793 = vmatmul.mubr.msk.f32.gmra.mrb[4].mxu0 %vm61_vm5, %v2376_v57 }
  0x8d   :  { %1794 = vmatprep.mubr.msk.f32.mxu0 %vm64_vm6, %v2376_v57 }
  0x90   :  { %1795 = vmatmul.mubr.msk.f32.gmra.mrb[6].mxu0 %vm63_vm7, %v2376_v57 }
  0x91   :  { %2047 = vmatprep.mubr.msk.f32.mxu0 %vm2378_vm8, %v2379_v7 }
 0x157   :  { %v1860_v8 = vpop.f32.mrb[0].mxu0 }
 0x158   :  { %v1861_v9 = vpop.f32.mrb[1].mxu0 }
 0x159   :  { %v1862_v10 = vadd.f32 %v1861_v9, %v1860_v8  ;;  %v940_v8 = vld [vmem:[%s2806_s7 + $0x8] sm:$0xff] }
 0x15b   :  { %v1863_v11 = vpop.f32.mrb[2].mxu0  ;;  %1978 = vmatprep.mubr.msk.f32.mxu1 %vm217_vm9, %v1862_v10  ;;  %v941_v10 = vld [vmem:[%s2806_s7 + $0x10] sm:$0xff] }
 0x15c   :  { %v1864_v12 = vpop.f32.mrb[3].mxu0 }
 0x15d   :  { %v1865_v13 = vadd.f32 %v1864_v12, %v1863_v11  ;;  %v942_v11 = vld [vmem:[%s2806_s7 + $0x18] sm:$0xff] }
 0x15e   :  { %v2684_v12 = vpack.c.bf16 %v942_v11, %v941_v10  ;;  %v1823_v10 = vld [vmem:[%s2809_s10] ss:$0 sm:$0xff] }
 0x15f   :  { %v1866_v14 = vpop.f32.mrb[4].mxu0  ;;  %1979 = vmatmul.mubr.msk.f32.vlgmr.msra.gmra.mrb[0].mxu1 %vm217_vm9, %v1865_v13 }
 0x160   :  { %v1867_v15 = vpop.f32.mrb[5].mxu0  ;;  %2226 = vmatpush3.bf16.msra.mxu1 %v2561_v3 }
 0x161   :  { %v1868_v16 = vadd.f32 %v1867_v15, %v1866_v14  ;;  %2227 = vmatprep.subr.bf16.mxu1 %v2377_v2 }
 0x163   :  { %v1869_v17 = vpop.f32.mrb[6].mxu0  ;;  %1981 = vmatprep.mubr.msk.f32.mxu1 %vm217_vm9, %v1868_v16 }
 0x164   :  { %v1870_v18 = vpop.f32.mrb[7].mxu0  ;;  %2229 = vmatpush3.bf16.msra.mxu1 %v2572_v6 }
 0x165   :  { %v1871_v19 = vadd.f32 %v1870_v18, %v1869_v17  ;;  %2230 = vmatprep.subr.bf16.mxu1 %v2377_v2 }
 0x167   :  { %1982 = vmatmul.mubr.msk.f32.gmra.mrb[2].mxu1 %vm217_vm9, %v1871_v19 }
 0x168   :  { %1992 = vmatprep.mubr.msk.f32.mxu1 %vm2378_vm8, %v2379_v7 }
 0x16b   :  { %1993 = vmatmul.mubr.msk.f32.vlgmr.msra.gmra.mrb[4].mxu1 %vm315_vm10, %v2591_v20 }
 0x16c   :  { %2232 = vmatpush3.bf16.msra.mxu1 %v2561_v3  ;;  %2003 = vmatprep.mubr.msk.f32.mxu1 %vm2378_vm8, %v2379_v7 }
 0x16d   :  { %2233 = vmatprep.subr.bf16.mxu1 %v2377_v2 }
 0x170   :  { %2235 = vmatpush3.bf16.msra.mxu1 %v2572_v6 }
 0x171   :  { %2236 = vmatprep.subr.bf16.mxu1 %v2377_v2 }
 0x232   :  { %v1980_v22 = vpop.f32.mrb[0].mxu1 }
 0x233   :  { %v302_v23 = vadd.f32 %v1980_v22, %v1797_v21  ;;  %v296_v24 = vpop.f32.mrb[1].mxu1 }
 0x234   :  { %v297_v29 = vadd.f32 %v1797_v21, %v296_v24 }
 0x23a   :  { %v1983_v25 = vpop.f32.mrb[2].mxu1 }
 0x23b   :  { %v2604_v26 = vadd.f32 %v1983_v25, %v1797_v21  ;;  %v306_v27 = vpop.f32.mrb[3].mxu1 }
 0x23c   :  { %v2606_v28 = vadd.f32 %v1797_v21, %v306_v27 }
 0x23e   :  { %v384_v30 = vpop.f32.mrb[4].mxu1 }
 0x23f   :  { %v388_v31 = vadd.f32 %v384_v30, %v297_v29  ;;  %v1994_v32 = vpop.f32.mrb[5].mxu1 }
 0x241   :  { %2343 = vtanh.f32 %v388_v31 }
 0x24b   :  { %v2608_v33 = vpop.eup %2343 }
 0x24c   :  { %2004 = vmatmul.mubr.msk.f32.vlgmr.msra.gmra.mrb[6].mxu1 %vm315_vm10, %v2608_v33 }
 0x24d   :  { %2238 = vmatpush3.bf16.msra.mxu1 %v2561_v3  ;;  %2014 = vmatprep.mubr.msk.f32.mxu1 %vm2378_vm8, %v2379_v7 }
 0x24e   :  { %2239 = vmatprep.subr.bf16.mxu1 %v2377_v2 }
 0x251   :  { %2241 = vmatpush3.bf16.msra.mxu1 %v2572_v6 }
 0x252   :  { %2242 = vmatprep.subr.bf16.mxu1 %v2377_v2 }
 0x31f   :  { %v459_v34 = vpop.f32.mrb[6].mxu1 }
 0x320   :  { %v464_v35 = vrot.slane %v459_v34, 4  ;;  %v2005_v36 = vpop.f32.mrb[7].mxu1 }
 0x322   :  { %v466_v37 = vadd.f32 %v464_v35, %v297_v29 }
 0x324   :  { %2345 = vtanh.f32 %v466_v37 }
 0x32e   :  { %v2346_v38 = vpop.eup %2345 }
 0x32f   :  { %v469_v39 = vrot.slane %v2346_v38, 4 }
 0x331   :  { %2015 = vmatmul.mubr.msk.f32.vlgmr.msra.gmra.mrb[8].mxu1 %vm315_vm10, %v469_v39 }
 0x332   :  { %2244 = vmatpush3.bf16.msra.mxu1 %v2561_v3  ;;  %2025 = vmatprep.mubr.msk.f32.mxu1 %vm2378_vm8, %v2379_v7 }
 0x333   :  { %2245 = vmatprep.subr.bf16.mxu1 %v2377_v2 }
 0x336   :  { %2247 = vmatpush3.bf16.msra.mxu1 %v2572_v6 }
 0x337   :  { %2248 = vmatprep.subr.bf16.mxu1 %v2377_v2 }
 0x404   :  { %v538_v40 = vpop.f32.mrb[8].mxu1 }
 0x405   :  { %v542_v41 = vadd.f32 %v538_v40, %v302_v23  ;;  %v2016_v42 = vpop.f32.mrb[9].mxu1 }
 0x407   :  { %2347 = vtanh.f32 %v542_v41 }
 0x411   :  { %v2348_v43 = vpop.eup %2347 }
 0x412   :  { %2026 = vmatmul.mubr.msk.f32.vlgmr.msra.gmra.mrb[10].mxu1 %vm315_vm10, %v2348_v43 }
 0x413   :  { %2250 = vmatpush3.bf16.msra.mxu1 %v2561_v3  ;;  %2036 = vmatprep.mubr.msk.f32.mxu1 %vm2378_vm8, %v2379_v7 }
 0x414   :  { %2251 = vmatprep.subr.bf16.mxu1 %v2377_v2 }
 0x417   :  { %2253 = vmatpush3.bf16.msra.mxu1 %v2572_v6 }
 0x418   :  { %2260 = vmatprep.subr.bf16.mxu1 %v2377_v2 }
 0x4e5   :  { %v613_v44 = vpop.f32.mrb[10].mxu1 }
 0x4e6   :  { %v618_v45 = vrot.slane %v613_v44, 4  ;;  %v2027_v46 = vpop.f32.mrb[11].mxu1 }
 0x4e8   :  { %v620_v47 = vadd.f32 %v618_v45, %v302_v23 }
 0x4ea   :  { %2349 = vtanh.f32 %v620_v47 }
 0x4f4   :  { %v2350_v48 = vpop.eup %2349 }
 0x4f5   :  { %v623_v49 = vrot.slane %v2350_v48, 4  ;;  %v932_v4 = vsel %vm930_vm11, %v2348_v43, %v2350_v48 }
 0x4f7   :  { %2037 = vmatmul.mubr.msk.f32.vlgmr.msra.gmra.mrb[12].mxu1 %vm315_vm10, %v623_v49 }
 0x4f8   :  { %2262 = vmatpush3.bf16.msra.mxu1 %v2561_v3  ;;  %2058 = vmatprep.mubr.msk.f32.mxu1 %vm2378_vm8, %v2379_v7 }
 0x4f9   :  { %2263 = vmatprep.subr.bf16.mxu1 %v2377_v2 }
 0x4fc   :  { %2265 = vmatpush3.bf16.msra.mxu1 %v2572_v6 }
 0x4fd   :  { %2273 = vmatprep.subr.bf16.mxu1 %v2272_v56 }
 0x5ca   :  { %v692_v50 = vpop.f32.mrb[12].mxu1 }
 0x5cb   :  { %v696_v51 = vadd.f32 %v692_v50, %v2606_v28  ;;  %v2038_v52 = vpop.f32.mrb[13].mxu1 }
 0x5cd   :  { %2351 = vtanh.f32 %v696_v51 }
 0x5d7   :  { %v2352_v53 = vpop.eup %2351 }
 0x5d8   :  { %2048 = vmatmul.mubr.msk.f32.vlgmr.msra.gmra.mrb[8].mxu0 %vm315_vm10, %v2352_v53 }
 0x5d9   :  { %2268 = vmatpush3.bf16.msra.mxu0 %v2561_v3  ;;  %2069 = vmatprep.mubr.msk.f32.mxu0 %vm2378_vm8, %v2379_v7  ;;  %v931_v3 = vsel %vm930_vm11, %v2608_v33, %v2346_v38 }
 0x5da   :  { %2269 = vmatprep.subr.bf16.mxu0 %v2377_v2 }
 0x5dd   :  { %2271 = vmatpush3.bf16.msra.mxu0 %v2572_v6  ;;  %v939_v6 = vld [vmem:[%s2806_s7] sm:$0xff] }
 0x5de   :  { %2280 = vmatprep.subr.bf16.mxu0 %v2377_v2  ;;  %v2674_v9 = vpack.c.bf16 %v940_v8, %v939_v6 }
 0x6ab   :  { %v767_v57 = vpop.f32.mrb[8].mxu0 }
 0x6ac   :  { %v772_v58 = vrot.slane %v767_v57, 4  ;;  %v2049_v59 = vpop.f32.mrb[9].mxu0 }
 0x6ae   :  { %v774_v60 = vadd.f32 %v772_v58, %v2606_v28 }
 0x6b0   :  { %2353 = vtanh.f32 %v774_v60 }
 0x6ba   :  { %v2354_v63 = vpop.eup %2353 }
 0x6bb   :  { %v777_v0 = vrot.slane %v2354_v63, 4  ;;  %v933_v5 = vsel %vm930_vm11, %v2352_v53, %v2354_v63 }
 0x6bd   :  { %2059 = vmatmul.mubr.msk.f32.vlgmr.msra.gmra.mrb[14].mxu1 %vm315_vm10, %v777_v0 }
 0x6be   :  { %2275 = vmatpush3.bf16.msra.mxu1 %v2272_v56  ;;  %2080 = vmatprep.mubr.msk.f32.mxu1 %vm315_vm10, %v931_v3  ;;  %v1664_v56 = vld [vmem:[%s2808_s9 + $0x8] sm:$0xff] }
 0x6bf   :  { %2277 = vmatprep.subr.bf16.mxu1 %v2276_v1  ;;  %v2328_v57 = vpack.c.bf16 %v1664_v56, %v1663_v55 }
 0x6c2   :  { %2279 = vmatpush3.bf16.msra.mxu1 %v2276_v1 }
 0x6c3   :  { %2286 = vmatprep.subr.bf16.mxu1 %v2377_v2 }
 0x6c5   :  { %2081 = vmatmul.mubr.msk.f32.vlgmr.msra.gmra.mrb[16].mxu1 %vm315_vm10, %v932_v4 }
 0x6c6   :  { %2083 = vmatprep.mubr.msk.f32.mxu1 %vm315_vm10, %v933_v5  ;;  %2288 = vmatpush3.bf16.msra.mxu1 %v2674_v9 }
 0x6c7   :  { %2289 = vmatprep.subr.bf16.mxu1 %v2377_v2 }
 0x6ca   :  { %2291 = vmatpush3.bf16.msra.mxu1 %v2684_v12 }
 0x6cb   :  { %2298 = vmatprep.subr.bf16.mxu1 %v2377_v2 }
 0x790   :  { %v846_v13 = vpop.f32.mrb[14].mxu1 }
 0x791   :  { %v850_v14 = vadd.f32 %v846_v13, %v2604_v26  ;;  %v2060_v15 = vpop.f32.mrb[15].mxu1 }
 0x793   :  { %2355 = vtanh.f32 %v850_v14 }
 0x798   :  { %v2082_v16 = vpop.f32.mrb[16].mxu1 }
 0x799   :  { %v1028_v17 = vpop.f32.mrb[17].mxu1 }
 0x79d   :  { %v2356_v18 = vpop.eup %2355 }
 0x79e   :  { %2070 = vmatmul.mubr.msk.f32.vlgmr.msra.gmra.mrb[10].mxu0 %vm315_vm10, %v2356_v18 }
 0x79f   :  { %2282 = vmatpush3.bf16.msra.mxu0 %v2674_v9  ;;  %2094 = vmatprep.mubr.msk.f32.mxu0 %vm2378_vm8, %v2379_v7 }
 0x7a0   :  { %2283 = vmatprep.subr.bf16.mxu0 %v2377_v2 }
 0x7a3   :  { %2285 = vmatpush3.bf16.msra.mxu0 %v2684_v12 }
 0x7a4   :  { %2292 = vmatprep.subr.bf16.mxu0 %v2377_v2 }
 0x7a6   :  { %2095 = vmatmul.mubr.msk.f32.vlgmr.msra.gmra.mrb[12].mxu0 %vm315_vm10, %v2591_v20  ;;  %v2708_v20 = vld [vmem:[%s2807_s8] ss:$0 sm:$0xff] }
 0x7a7   :  { %2294 = vmatpush3.bf16.msra.mxu0 %v2674_v9  ;;  %2116 = vmatprep.mubr.msk.f32.mxu0 %vm2378_vm8, %v2379_v7  ;;  %v1029_v24 = vadd.f32 %v2708_v20, %v1028_v17  ;;  %v1034_v39 = vadd.f32 %v2082_v16, %v2708_v20 }
 0x7a8   :  { %2295 = vmatprep.subr.bf16.mxu0 %v2377_v2 }
 0x7ab   :  { %2297 = vmatpush3.bf16.msra.mxu0 %v2684_v12 }
 0x7ac   :  { %2304 = vmatprep.subr.bf16.mxu0 %v2377_v2 }
 0x871   :  { %v921_v19 = vpop.f32.mrb[10].mxu0 }
 0x872   :  { %v926_v21 = vrot.slane %v921_v19, 4  ;;  %v2071_v22 = vpop.f32.mrb[11].mxu0 }
 0x874   :  { %v928_v23 = vadd.f32 %v926_v21, %v2604_v26 }
 0x876   :  { %2357 = vtanh.f32 %v928_v23 }
 0x879   :  { %v1113_v25 = vpop.f32.mrb[12].mxu0 }
 0x87a   :  { %v1117_v27 = vadd.f32 %v1113_v25, %v1029_v24  ;;  %v2096_v28 = vpop.f32.mrb[13].mxu0 }
 0x87c   :  { %2359 = vtanh.f32 %v1117_v27 }
 0x880   :  { %v2358_v29 = vpop.eup %2357 }
 0x881   :  { %v934_v30 = vsel %vm930_vm11, %v2356_v18, %v2358_v29 }
 0x882   :  { %2084 = vmatmul.mubr.msk.f32.gmra.mrb[18].mxu1 %vm315_vm10, %v934_v30 }
 0x883   :  { %2105 = vmatprep.mubr.msk.f32.mxu1 %vm2378_vm8, %v2379_v7 }
 0x886   :  { %v2715_v26 = vpop.eup %2359 }
 0x887   :  { %2106 = vmatmul.mubr.msk.f32.vlgmr.msra.gmra.mrb[20].mxu1 %vm315_vm10, %v2715_v26 }
 0x888   :  { %2300 = vmatpush3.bf16.msra.mxu1 %v2674_v9  ;;  %2127 = vmatprep.mubr.msk.f32.mxu1 %vm2378_vm8, %v2379_v7 }
 0x889   :  { %2301 = vmatprep.subr.bf16.mxu1 %v2377_v2 }
 0x88c   :  { %2303 = vmatpush3.bf16.msra.mxu1 %v2684_v12 }
 0x88d   :  { %2310 = vmatprep.subr.bf16.mxu1 %v2377_v2 }
 0x955   :  { %v2725_v31 = vpop.f32.mrb[18].mxu1 }
 0x956   :  { %v1038_v32 = vpop.f32.mrb[19].mxu1  ;;  %v1044_v5 = vadd.f32 %v2725_v31, %v2708_v20 }
 0x957   :  { %v1039_v50 = vadd.f32 %v2708_v20, %v1038_v32 }
 0x95a   :  { %v1188_v33 = vpop.f32.mrb[20].mxu1 }
 0x95b   :  { %v1193_v34 = vrot.slane %v1188_v33, 4  ;;  %v2107_v35 = vpop.f32.mrb[21].mxu1 }
 0x95d   :  { %v1195_v36 = vadd.f32 %v1193_v34, %v1029_v24 }
 0x95f   :  { %2361 = vtanh.f32 %v1195_v36 }
 0x969   :  { %v2362_v37 = vpop.eup %2361 }
 0x96a   :  { %v1198_v38 = vrot.slane %v2362_v37, 4  ;;  %v1659_v1 = vsel %vm930_vm11, %v2715_v26, %v2362_v37 }
 0x96c   :  { %2117 = vmatmul.mubr.msk.f32.vlgmr.msra.gmra.mrb[14].mxu0 %vm315_vm10, %v1198_v38 }
 0x96d   :  { %2306 = vmatpush3.bf16.msra.mxu0 %v2674_v9  ;;  %2138 = vmatprep.mubr.msk.f32.mxu0 %vm2378_vm8, %v2379_v7 }
 0x96e   :  { %2307 = vmatprep.subr.bf16.mxu0 %v2377_v2 }
 0x971   :  { %2309 = vmatpush3.bf16.msra.mxu0 %v2684_v12 }
 0x972   :  { %2316 = vmatprep.subr.bf16.mxu0 %v2377_v2 }
 0xa3f   :  { %v1267_v40 = vpop.f32.mrb[14].mxu0 }
 0xa40   :  { %v1271_v41 = vadd.f32 %v1267_v40, %v1034_v39  ;;  %v2118_v42 = vpop.f32.mrb[15].mxu0 }
 0xa42   :  { %2363 = vtanh.f32 %v1271_v41 }
 0xa4c   :  { %v2364_v43 = vpop.eup %2363 }
 0xa4d   :  { %2128 = vmatmul.mubr.msk.f32.vlgmr.msra.gmra.mrb[22].mxu1 %vm315_vm10, %v2364_v43 }
 0xa4e   :  { %2312 = vmatpush3.bf16.msra.mxu1 %v2674_v9  ;;  %2149 = vmatprep.mubr.msk.f32.mxu1 %vm2378_vm8, %v2379_v7 }
 0xa4f   :  { %2313 = vmatprep.subr.bf16.mxu1 %v2377_v2 }
 0xa52   :  { %2315 = vmatpush3.bf16.msra.mxu1 %v2684_v12 }
 0xa53   :  { %2322 = vmatprep.subr.bf16.mxu1 %v2377_v2 }
 0xb20   :  { %v1342_v44 = vpop.f32.mrb[22].mxu1 }
 0xb21   :  { %v1347_v45 = vrot.slane %v1342_v44, 4  ;;  %v2129_v46 = vpop.f32.mrb[23].mxu1 }
 0xb23   :  { %v1349_v47 = vadd.f32 %v1347_v45, %v1034_v39 }
 0xb25   :  { %2365 = vtanh.f32 %v1349_v47 }
 0xb2f   :  { %v2366_v48 = vpop.eup %2365 }
 0xb30   :  { %v1352_v49 = vrot.slane %v2366_v48, 4  ;;  %v1660_v3 = vsel %vm930_vm11, %v2364_v43, %v2366_v48 }
 0xb32   :  { %2139 = vmatmul.mubr.msk.f32.vlgmr.msra.gmra.mrb[16].mxu0 %vm315_vm10, %v1352_v49 }
 0xb33   :  { %2318 = vmatpush3.bf16.msra.mxu0 %v2674_v9  ;;  %2160 = vmatprep.mubr.msk.f32.mxu0 %vm2378_vm8, %v2379_v7 }
 0xb34   :  { %2319 = vmatprep.subr.bf16.mxu0 %v2377_v2 }
 0xb37   :  { %2321 = vmatpush3.bf16.msra.mxu0 %v2684_v12 }
 0xb38   :  { %2329 = vmatprep.subr.bf16.mxu0 %v2328_v57 }
 0xc05   :  { %v1421_v51 = vpop.f32.mrb[16].mxu0 }
 0xc06   :  { %v1425_v52 = vadd.f32 %v1421_v51, %v1039_v50  ;;  %v2140_v53 = vpop.f32.mrb[17].mxu0 }
 0xc08   :  { %2367 = vtanh.f32 %v1425_v52 }
 0xc12   :  { %v2368_v54 = vpop.eup %2367 }
 0xc13   :  { %2150 = vmatmul.mubr.msk.f32.vlgmr.msra.gmra.mrb[24].mxu1 %vm315_vm10, %v2368_v54 }
 0xc14   :  { %2324 = vmatpush3.bf16.msra.mxu1 %v2674_v9  ;;  %2171 = vmatprep.mubr.msk.f32.mxu1 %vm2378_vm8, %v2379_v7  ;;  %v1666_v7 = vld [vmem:[%s2808_s9 + $0x18] sm:$0xff] }
 0xc15   :  { %2325 = vmatprep.subr.bf16.mxu1 %v2377_v2  ;;  %v1665_v2 = vld [vmem:[%s2808_s9 + $0x10] sm:$0xff] }
 0xc16   :  { %v2332_v0 = vpack.c.bf16 %v1666_v7, %v1665_v2 }
 0xc18   :  { %2327 = vmatpush3.bf16.msra.mxu1 %v2684_v12 }
 0xce6   :  { %v1496_v58 = vpop.f32.mrb[24].mxu1 }
 0xce7   :  { %v1501_v59 = vrot.slane %v1496_v58, 4  ;;  %v2151_v60 = vpop.f32.mrb[25].mxu1 }
 0xce9   :  { %v1503_v61 = vadd.f32 %v1501_v59, %v1039_v50 }
 0xceb   :  { %2369 = vtanh.f32 %v1503_v61 }
 0xcf5   :  { %v2370_v62 = vpop.eup %2369 }
 0xcf6   :  { %v1506_v63 = vrot.slane %v2370_v62, 4  ;;  %v1661_v4 = vsel %vm930_vm11, %v2368_v54, %v2370_v62 }
 0xcf8   :  { %2161 = vmatmul.mubr.msk.f32.vlgmr.msra.gmra.mrb[18].mxu0 %vm315_vm10, %v1506_v63 }
 0xcf9   :  { %2331 = vmatpush3.bf16.msra.mxu0 %v2328_v57  ;;  %2182 = vmatprep.mubr.msk.f32.mxu0 %vm315_vm10, %v1659_v1 }
 0xcfa   :  { %2333 = vmatprep.subr.bf16.mxu0 %v2332_v0 }
 0xcfd   :  { %2335 = vmatpush3.bf16.msra.mxu0 %v2332_v0 }
 0xd00   :  { %2183 = vmatmul.mubr.msk.f32.vlgmr.msra.gmra.mrb[20].mxu0 %vm315_vm10, %v1660_v3 }
 0xd01   :  { %2185 = vmatprep.mubr.msk.f32.mxu0 %vm315_vm10, %v1661_v4 }
 0xdcb   :  { %v1575_v6 = vpop.f32.mrb[18].mxu0 }
 0xdcc   :  { %v1579_v8 = vadd.f32 %v1575_v6, %v1044_v5  ;;  %v2162_v9 = vpop.f32.mrb[19].mxu0 }
 0xdce   :  { %2371 = vtanh.f32 %v1579_v8 }
 0xdd3   :  { %v2184_v11 = vpop.f32.mrb[20].mxu0 }
 0xdd4   :  { %v1758_v12 = vadd.f32 %v2184_v11, %v1823_v10  ;;  %v1752_v13 = vpop.f32.mrb[21].mxu0 }
 0xdd5   :  { %v1753_v14 = vadd.f32 %v1823_v10, %v1752_v13 }
 0xdd6   :  { %1773 = vst.msk [vmem:[%s2810_s11 + $0x8] sm:$0xff] %vm1771_vm12, %v1758_v12 }
 0xdd7   :  { %1772 = vst.msk [vmem:[%s2810_s11] sm:$0xff] %vm1771_vm12, %v1753_v14 }
 0xdd8   :  { %v2372_v15 = vpop.eup %2371 }
 0xdd9   :  { %2172 = vmatmul.mubr.msk.f32.vlgmr.msra.gmra.mrb[26].mxu1 %vm315_vm10, %v2372_v15 }
 0xeac   :  { %v1650_v16 = vpop.f32.mrb[26].mxu1 }
 0xead   :  { %v1655_v17 = vrot.slane %v1650_v16, 4  ;;  %v2173_v18 = vpop.f32.mrb[27].mxu1 }
 0xeaf   :  { %v1657_v19 = vadd.f32 %v1655_v17, %v1044_v5 }
 0xeb1   :  { %2373 = vtanh.f32 %v1657_v19 }
 0xebb   :  { %v2374_v21 = vpop.eup %2373 }
 0xebc   :  { %v1662_v22 = vsel %vm930_vm11, %v2372_v15, %v2374_v21 }
 0xebd   :  { %2186 = vmatmul.mubr.msk.f32.gmra.mrb[22].mxu0 %vm315_vm10, %v1662_v22 }
 0xf90   :  { %v2187_v23 = vpop.f32.mrb[22].mxu0 }
 0xf91   :  { %v1768_v20 = vadd.f32 %v2187_v23, %v1823_v10  ;;  %v1762_v24 = vpop.f32.mrb[23].mxu0 }
 0xf92   :  { %v1763_v25 = vadd.f32 %v1823_v10, %v1762_v24 }
 0xf93   :  { %1775 = vst.msk [vmem:[%s2810_s11 + $0x18] sm:$0xff] %vm1771_vm12, %v1768_v20 }
 0xf94   :  { %1774 = vst.msk [vmem:[%s2810_s11 + $0x10] sm:$0xff] %vm1771_vm12, %v1763_v25 }

</bundles_post_ra>
